<compile_context>
chip_gen: v7x
topology: tpu7x:2x2x1
jax: 0.10.0
libtpu: 0.0.40
codegen_flags: <defaults>
</compile_context>

<pallas_src>
import jax
import jax.numpy as jnp
from jax.experimental import pallas as pl
from jax.experimental.pallas import tpu as pltpu

EPS = 1e-7
MAX_TILE_HW = 4096   # lane-aligned spatial streaming tile (multiple of 128)
MAX_TILE_N = 128     # dots tile; bounds VMEM and vreg pressure independent of B*C


def _make_kernel(tile_n, tile_hw, acc_w, valid_last):
    """Build the kernel with compile-time tiling constants closed over.

    valid_last: number of valid lanes in the LAST spatial tile
                (== tile_hw when hw divides evenly).
    """
    num_chunks = tile_hw // acc_w

    def kernel(pr_ref, gt_ref, iou_ref, inter_acc, tot_acc):
        # grid = (N tiles [parallel], HW tiles [arbitrary / reduction])
        k = pl.program_id(1)
        last_k = pl.num_programs(1) - 1

        @pl.when(k == 0)
        def _():
            inter_acc[...] = jnp.zeros_like(inter_acc)
            tot_acc[...] = jnp.zeros_like(tot_acc)

        def accum_chunk(j, n_valid):
            # Stream one (tile_n, acc_w) chunk straight from the input refs
            # (static slice = zero-cost view), cast to f32 in-register, and
            # accumulate into the lane-dense VMEM scratch accumulators.
            lo = j * acc_w
            p = pr_ref[:, lo:lo + acc_w].astype(jnp.float32)
            g = gt_ref[:, lo:lo + acc_w].astype(jnp.float32)
            if n_valid < acc_w:
                # Only the single boundary chunk of the last spatial tile is
                # masked; both operands are zeroed so padded garbage (even
                # NaN/Inf) can never leak into inter/union.
                lane = jax.lax.broadcasted_iota(jnp.int32, (tile_n, acc_w), 1)
                mask = lane < n_valid
                p = jnp.where(mask, p, 0.0)
                g = jnp.where(mask, g, 0.0)
            inter_acc[...] += p * g
            tot_acc[...] += p + g

        def accum_tile(lanes_valid):
            full = min(num_chunks, lanes_valid // acc_w)
            for j in range(full):
                accum_chunk(j, acc_w)
            rem = lanes_valid - full * acc_w
            if rem > 0:
                accum_chunk(full, rem)
            # chunks entirely past `lanes_valid` are skipped (never loaded)

        if valid_last == tile_hw:
            # No ragged spatial tail anywhere: single unmasked path.
            accum_tile(tile_hw)
        else:
            @pl.when(k < last_k)
            def _():
                accum_tile(tile_hw)          # interior tiles: fully valid

            @pl.when(k == last_k)
            def _():
                accum_tile(valid_last)       # last tile: masked boundary chunk

        @pl.when(k == last_k)
        def _():
            # Single cross-lane (XLU) reduction per N tile in the epilogue.
            inter = jnp.sum(inter_acc[...], axis=1, keepdims=True)   # (tile_n, 1)
            total = jnp.sum(tot_acc[...], axis=1, keepdims=True)
            union = total - inter
            iou_ref[...] = (inter + EPS) / (union + EPS)

    return kernel


def iou_dots_loss_all(pr, gt):
    """JAX/Pallas equivalent of IouDotsLossAll.forward.

    pr, gt: (B, C, H, W) arrays (NCHW), any float dtype.  Returns scalar f32.
    """
    assert pr.shape == gt.shape
    b, c = pr.shape[0], pr.shape[1]
    n = b * c
    pr2 = pr.reshape(n, -1)   # keep native dtype; no f32 copy in HBM
    gt2 = gt.reshape(n, -1)
    hw = pr2.shape[1]

    # Spatial tile: large, lane-aligned; ragged tail handled in-kernel on the
    # last grid step only (no pad copy, no per-step masking).
    if hw >= 128:
        tile_hw = min(MAX_TILE_HW, ((hw + 127) // 128) * 128)
        acc_w = 128
    else:
        tile_hw = hw          # full dim, single chunk
        acc_w = hw

    num_hw_tiles = pl.cdiv(hw, tile_hw)
    valid_last = hw - (num_hw_tiles - 1) * tile_hw   # compile-time constant

    # Dots tile: bounded so VMEM/vreg use is independent of B*C.  When n > 8,
    # pick tile_n so the "parallel" N axis has >= 2 blocks (both v7x cores busy).
    if n <= 8:
        tile_n = n
    else:
        half = -(-n // 2)
        tile_n = min(MAX_TILE_N, ((half + 7) // 8) * 8)

    grid = (pl.cdiv(n, tile_n), num_hw_tiles)

    kernel = _make_kernel(tile_n, tile_hw, acc_w, valid_last)

    in_bytes = n * hw * (jnp.dtype(pr2.dtype).itemsize + jnp.dtype(gt2.dtype).itemsize)
    cost = pl.CostEstimate(
        flops=4 * n * hw,          # mul + 3 adds per element (approx)
        transcendentals=0,
        bytes_accessed=in_bytes + n * 4,
    )

    iou = pl.pallas_call(
        kernel,
        out_shape=jax.ShapeDtypeStruct((n, 1), jnp.float32),
        grid_spec=pltpu.PrefetchScalarGridSpec(
            num_scalar_prefetch=0,
            grid=grid,
            in_specs=[
                pl.BlockSpec((tile_n, tile_hw), lambda i, k: (i, k)),
                pl.BlockSpec((tile_n, tile_hw), lambda i, k: (i, k)),
            ],
            out_specs=pl.BlockSpec((tile_n, 1), lambda i, k: (i, 0)),
            scratch_shapes=[
                pltpu.VMEM((tile_n, acc_w), jnp.float32),  # intersection partials
                pltpu.VMEM((tile_n, acc_w), jnp.float32),  # sum(pr)+sum(gt) partials
            ],
        ),
        compiler_params=pltpu.CompilerParams(
            # N axis parallel (megacore shards rows), HW axis is the reduction.
            dimension_semantics=("parallel", "arbitrary"),
            vmem_limit_bytes=32 * 1024 * 1024,
        ),
        cost_estimate=cost,
    )(pr2, gt2)

    # Tiny final reduction (mean over B*C dots) stays in the JAX wrapper.
    return 1.0 - jnp.mean(iou)


def _reference_loss(pr, gt, eps=EPS):
    n = pr.shape[0] * pr.shape[1]
    pr2 = pr.reshape(n, -1).astype(jnp.float32)
    gt2 = gt.reshape(n, -1).astype(jnp.float32)
    inter = jnp.sum(pr2 * gt2, axis=1)
    union = jnp.sum(pr2, axis=1) + jnp.sum(gt2, axis=1) - inter
    iou = (inter + eps) / (union + eps)
    return 1.0 - jnp.mean(iou)


if __name__ == "__main__":
    key = jax.random.PRNGKey(0)
    k1, k2, k3, k4, k5, k6 = jax.random.split(key, 6)

    # Primary small-shape example (B, C, H, W) = (2, 4, 16, 16).
    B, C, H, W = 2, 4, 16, 16
    pr = jax.nn.sigmoid(jax.random.normal(k1, (B, C, H, W), dtype=jnp.float32))
    gt = (jax.random.uniform(k2, (B, C, H, W)) > 0.5).astype(jnp.float32)
    loss = iou_dots_loss_all(pr, gt)
    jax.block_until_ready(loss)
    ref = _reference_loss(pr, gt)
    assert jnp.allclose(loss, ref, atol=1e-5, rtol=1e-5), (loss, ref)

    # Ragged dots (n % tile_n != 0) + ragged spatial (hw % 128 != 0).
    pr_r = jax.nn.sigmoid(jax.random.normal(k3, (3, 5, 13, 11), dtype=jnp.float32))
    gt_r = (jax.random.uniform(k4, (3, 5, 13, 11)) > 0.5).astype(jnp.float32)
    loss_r = iou_dots_loss_all(pr_r, gt_r)
    jax.block_until_ready(loss_r)
    ref_r = _reference_loss(pr_r, gt_r)
    assert jnp.allclose(loss_r, ref_r, atol=1e-5, rtol=1e-5), (loss_r, ref_r)

    # Multi-tile spatial reduction (hw > MAX_TILE_HW) with a ragged last tile.
    pr_m = jax.nn.sigmoid(jax.random.normal(k5, (2, 3, 70, 70), dtype=jnp.float32))
    gt_m = (jax.random.uniform(k6, (2, 3, 70, 70)) > 0.5).astype(jnp.float32)
    loss_m = iou_dots_loss_all(pr_m, gt_m)
    jax.block_until_ready(loss_m)
    ref_m = _reference_loss(pr_m, gt_m)
    assert jnp.allclose(loss_m, ref_m, atol=1e-5, rtol=1e-5), (loss_m, ref_m)

    print("KERNEL_OK")
</pallas_src>

<mosaic_0001>
module attributes {stable_mosaic.version = 11 : i64} {
  func.func @kernel(%arg0: i32, %arg1: i32, %arg2: memref<8x256xf32, #tpu.memory_space<vmem>>, %arg3: memref<8x256xf32, #tpu.memory_space<vmem>>, %arg4: memref<8x1xf32, #tpu.memory_space<vmem>>, %arg5: memref<8x128xf32, #tpu.memory_space<vmem>>, %arg6: memref<8x128xf32, #tpu.memory_space<vmem>>) attributes {dimension_semantics = [#tpu.dimension_semantics<parallel>, #tpu.dimension_semantics<arbitrary>], iteration_bounds = array<i64: 1, 1>, scalar_prefetch = 0 : i64, scratch_operands = 2 : i64, tpu.core_type = #tpu.core_type<tc>, window_params = [{transform_indices = @transform_0, window_bounds = array<i64: 8, 256>}, {transform_indices = @transform_1, window_bounds = array<i64: 8, 256>}, {transform_indices = @transform_2, window_bounds = array<i64: 8, 1>}]} {
    %c0_i32 = arith.constant 0 : i32
    %0 = arith.cmpi eq, %arg1, %c0_i32 : i32
    %1 = arith.extui %0 : i1 to i32
    %c0_i32_0 = arith.constant 0 : i32
    %2 = arith.cmpi ne, %1, %c0_i32_0 : i32
    scf.if %2 {
      %cst = arith.constant 0.000000e+00 : f32
      %26 = vector.broadcast %cst : f32 to vector<8x128xf32>
      %c0_25 = arith.constant 0 : index
      %c0_26 = arith.constant 0 : index
      %27 = vector.load %arg5[%c0_25, %c0_26] : memref<8x128xf32, #tpu.memory_space<vmem>>, vector<8x128xf32>
      tpu.vector_store %arg5[%c0_25, %c0_26], %26 {strides = array<i32>} : memref<8x128xf32, #tpu.memory_space<vmem>>, vector<8x128xf32>,
      %cst_27 = arith.constant 0.000000e+00 : f32
      %28 = vector.broadcast %cst_27 : f32 to vector<8x128xf32>
      %c0_28 = arith.constant 0 : index
      %c0_29 = arith.constant 0 : index
      %29 = vector.load %arg6[%c0_28, %c0_29] : memref<8x128xf32, #tpu.memory_space<vmem>>, vector<8x128xf32>
      tpu.vector_store %arg6[%c0_28, %c0_29], %28 {strides = array<i32>} : memref<8x128xf32, #tpu.memory_space<vmem>>, vector<8x128xf32>,
    } else {
    }
    %c0 = arith.constant 0 : index
    %c0_1 = arith.constant 0 : index
    %3 = vector.load %arg2[%c0, %c0_1] : memref<8x256xf32, #tpu.memory_space<vmem>>, vector<8x128xf32>
    %c0_2 = arith.constant 0 : index
    %c0_3 = arith.constant 0 : index
    %4 = vector.load %arg3[%c0_2, %c0_3] : memref<8x256xf32, #tpu.memory_space<vmem>>, vector<8x128xf32>
    %c0_4 = arith.constant 0 : index
    %c0_5 = arith.constant 0 : index
    %5 = vector.load %arg5[%c0_4, %c0_5] : memref<8x128xf32, #tpu.memory_space<vmem>>, vector<8x128xf32>
    %6 = arith.mulf %3, %4 : vector<8x128xf32>
    %7 = arith.addf %5, %6 : vector<8x128xf32>
    %c0_6 = arith.constant 0 : index
    %c0_7 = arith.constant 0 : index
    %8 = vector.load %arg5[%c0_6, %c0_7] : memref<8x128xf32, #tpu.memory_space<vmem>>, vector<8x128xf32>
    tpu.vector_store %arg5[%c0_6, %c0_7], %7 {strides = array<i32>} : memref<8x128xf32, #tpu.memory_space<vmem>>, vector<8x128xf32>,
    %c0_8 = arith.constant 0 : index
    %c0_9 = arith.constant 0 : index
    %9 = vector.load %arg6[%c0_8, %c0_9] : memref<8x128xf32, #tpu.memory_space<vmem>>, vector<8x128xf32>
    %10 = arith.addf %3, %4 : vector<8x128xf32>
    %11 = arith.addf %9, %10 : vector<8x128xf32>
    %c0_10 = arith.constant 0 : index
    %c0_11 = arith.constant 0 : index
    %12 = vector.load %arg6[%c0_10, %c0_11] : memref<8x128xf32, #tpu.memory_space<vmem>>, vector<8x128xf32>
    tpu.vector_store %arg6[%c0_10, %c0_11], %11 {strides = array<i32>} : memref<8x128xf32, #tpu.memory_space<vmem>>, vector<8x128xf32>,
    %c0_12 = arith.constant 0 : index
    %c128 = arith.constant 128 : index
    %13 = vector.load %arg2[%c0_12, %c128] : memref<8x256xf32, #tpu.memory_space<vmem>>, vector<8x128xf32>
    %c0_13 = arith.constant 0 : index
    %c128_14 = arith.constant 128 : index
    %14 = vector.load %arg3[%c0_13, %c128_14] : memref<8x256xf32, #tpu.memory_space<vmem>>, vector<8x128xf32>
    %c0_15 = arith.constant 0 : index
    %c0_16 = arith.constant 0 : index
    %15 = vector.load %arg5[%c0_15, %c0_16] : memref<8x128xf32, #tpu.memory_space<vmem>>, vector<8x128xf32>
    %16 = arith.mulf %13, %14 : vector<8x128xf32>
    %17 = arith.addf %15, %16 : vector<8x128xf32>
    %c0_17 = arith.constant 0 : index
    %c0_18 = arith.constant 0 : index
    %18 = vector.load %arg5[%c0_17, %c0_18] : memref<8x128xf32, #tpu.memory_space<vmem>>, vector<8x128xf32>
    tpu.vector_store %arg5[%c0_17, %c0_18], %17 {strides = array<i32>} : memref<8x128xf32, #tpu.memory_space<vmem>>, vector<8x128xf32>,
    %c0_19 = arith.constant 0 : index
    %c0_20 = arith.constant 0 : index
    %19 = vector.load %arg6[%c0_19, %c0_20] : memref<8x128xf32, #tpu.memory_space<vmem>>, vector<8x128xf32>
    %20 = arith.addf %13, %14 : vector<8x128xf32>
    %21 = arith.addf %19, %20 : vector<8x128xf32>
    %c0_21 = arith.constant 0 : index
    %c0_22 = arith.constant 0 : index
    %22 = vector.load %arg6[%c0_21, %c0_22] : memref<8x128xf32, #tpu.memory_space<vmem>>, vector<8x128xf32>
    tpu.vector_store %arg6[%c0_21, %c0_22], %21 {strides = array<i32>} : memref<8x128xf32, #tpu.memory_space<vmem>>, vector<8x128xf32>,
    %c0_i32_23 = arith.constant 0 : i32
    %23 = arith.cmpi eq, %arg1, %c0_i32_23 : i32
    %24 = arith.extui %23 : i1 to i32
    %c0_i32_24 = arith.constant 0 : i32
    %25 = arith.cmpi ne, %24, %c0_i32_24 : i32
    scf.if %25 {
      %c0_25 = arith.constant 0 : index
      %c0_26 = arith.constant 0 : index
      %26 = vector.load %arg5[%c0_25, %c0_26] : memref<8x128xf32, #tpu.memory_space<vmem>>, vector<8x128xf32>
      %cst = arith.constant dense<0.000000e+00> : vector<8xf32>
      %27 = vector.multi_reduction <add>, %26, %cst [1] : vector<8x128xf32> to vector<8xf32>
      %28 = vector.shape_cast %27 : vector<8xf32> to vector<8x1xf32>
      %c0_27 = arith.constant 0 : index
      %c0_28 = arith.constant 0 : index
      %29 = vector.load %arg6[%c0_27, %c0_28] : memref<8x128xf32, #tpu.memory_space<vmem>>, vector<8x128xf32>
      %cst_29 = arith.constant dense<0.000000e+00> : vector<8xf32>
      %30 = vector.multi_reduction <add>, %29, %cst_29 [1] : vector<8x128xf32> to vector<8xf32>
      %31 = vector.shape_cast %30 : vector<8xf32> to vector<8x1xf32>
      %32 = arith.subf %31, %28 : vector<8x1xf32>
      %cst_30 = arith.constant 1.000000e-07 : f32
      %33 = vector.broadcast %cst_30 : f32 to vector<8x1xf32>
      %34 = arith.addf %28, %33 : vector<8x1xf32>
      %cst_31 = arith.constant 1.000000e-07 : f32
      %35 = vector.broadcast %cst_31 : f32 to vector<8x1xf32>
      %36 = arith.addf %32, %35 : vector<8x1xf32>
      %37 = arith.divf %34, %36 : vector<8x1xf32>
      %c0_32 = arith.constant 0 : index
      %c0_33 = arith.constant 0 : index
      %38 = vector.load %arg4[%c0_32, %c0_33] : memref<8x1xf32, #tpu.memory_space<vmem>>, vector<8x1xf32>
      tpu.vector_store %arg4[%c0_32, %c0_33], %37 {strides = array<i32>} : memref<8x1xf32, #tpu.memory_space<vmem>>, vector<8x1xf32>,
    } else {
    }
    return
  }
  func.func @transform_0(%arg0: i32, %arg1: i32) -> (i32, i32) {
    %c0_i32 = arith.constant 0 : i32
    return %arg0, %arg1 : i32, i32
  }
  func.func @transform_1(%arg0: i32, %arg1: i32) -> (i32, i32) {
    %c0_i32 = arith.constant 0 : i32
    return %arg0, %arg1 : i32, i32
  }
  func.func @transform_2(%arg0: i32, %arg1: i32) -> (i32, i32) {
    %c0_i32 = arith.constant 0 : i32
    %c0_i32_0 = arith.constant 0 : i32
    return %arg0, %c0_i32 : i32, i32
  }
}

</mosaic_0001>

<bundles_post_ra>
// kernel: tpu_custom_call.1
= control target key start
LH: loop header
LB: loop body
LE: loop exit
PB: predicated region body
PF: predicated region fallthrough
CT: control target
= control target key end

     0   :  { %7 = vsyncpa [#allocation5], 0  ;;  %s179_s0 = inlined_call_operand.hbm [shape: f32[8,256], index: 0, kind: input, shape index: {}]   ;;  %s180_s1 = inlined_call_operand.hbm [shape: f32[8,256], index: 1, kind: input, shape index: {}]   ;;  %s181_s2 = inlined_call_operand.vmem [shape: f32[8,1], index: 2, kind: output, shape index: {}]  }
   0x1   :  { %8 = vsyncpa [#allocation7], 0  ;;  %s135_s9 = smov [#allocation4]   ;;  %s136_s11 = smov [#allocation6]  }
   0x2   :  { %s15_s10 = sshll.u32 %s135_s9, 4  ;;  %s25_s12 = sshll.u32 %s136_s11, 4  ;;  %s16_s10 = int_to_ptr.vmem [resolvable:$true] %s15_s10  ;;  %s26_s12 = int_to_ptr.vmem [resolvable:$true] %s25_s12 }
   0x3   :  { %s87_s15 = scalar_lea.hbm %s179_s0, 256 }
   0x4   :  { %p88_p0 = scmp.ne.s32.totalorder %s179_s0, %s87_s15  ;;  %p91_p1 = scmp.lt.u32.totalorder %s87_s15, %s179_s0 }
   0x6   :  { %p93_p2 = pnand %p91_p1, %p88_p0 }
   0x8   :  { %96 = shalt.err (!%p93_p2)
}
   0x9   :  { %s97_s20 = scalar_lea.vmem %s16_s10, 256  ;;  %p102_p4 = scmp.lt.s32.totalorder %s16_s10, %s16_s10 }
   0xa   :  { %p98_p3 = scmp.ne.s32.totalorder %s16_s10, %s97_s20  ;;  %p103_p5 = scmp.lt.s32.totalorder %s97_s20, %s97_s20 }
   0xc   :  { %p104_p6 = por %p103_p5, %p102_p4 }
   0xe   :  { %p105_p7 = pnand %p104_p6, %p98_p3 }
  0x10   :  { %108 = shalt.err (!%p105_p7)
}
  0x11   :  { %18 = dma.hbm_to_vmem [thread:$0]  %s179_s0, 256, %s16_s10, [#allocation5]  }
  0x12   :  { %s109_s25 = scalar_lea.hbm %s180_s1, 256 }
  0x13   :  { %p110_p8 = scmp.ne.s32.totalorder %s180_s1, %s109_s25  ;;  %p113_p9 = scmp.lt.u32.totalorder %s109_s25, %s180_s1 }
  0x15   :  { %p115_p10 = pnand %p113_p9, %p110_p8 }
  0x17   :  { %118 = shalt.err (!%p115_p10)
}
  0x18   :  { %s119_s30 = scalar_lea.vmem %s26_s12, 256  ;;  %p124_p12 = scmp.lt.s32.totalorder %s26_s12, %s26_s12 }
  0x19   :  { %p120_p11 = scmp.ne.s32.totalorder %s26_s12, %s119_s30  ;;  %p125_p13 = scmp.lt.s32.totalorder %s119_s30, %s119_s30 }
  0x1b   :  { %p126_p0 = por %p125_p13, %p124_p12 }
  0x1d   :  { %p127_p1 = pnand %p126_p0, %p120_p11 }
  0x1f   :  { %130 = shalt.err (!%p127_p1)
}
  0x20   :  { %28 = dma.hbm_to_vmem [thread:$0]  %s180_s1, 256, %s26_s12, [#allocation7]  }
  0x21   :  { %131 = dma.done.wait [#allocation5], 256  }
  0x22   :  { %132 = vsyncadd [#allocation5], 4294967040 }
  0x23   :  { %133 = dma.done.wait [#allocation7], 256  }
  0x24   :  { %134 = vsyncadd [#allocation7], 4294967040  ;;  %v41_v0 = vld [vmem:[#allocation4] sm:$0xff]  ;;  %v42_v1 = vld [vmem:[#allocation6] sm:$0xff]  ;;  %vm75_vm0 = vcmask 7168  }
  0x25   :  { %v51_v2 = vld [vmem:[#allocation4 + $0x8] sm:$0xff]  ;;  %v44_v3 = vmul.f32 %v42_v1, %v41_v0  ;;  %v52_v4 = vld [vmem:[#allocation6 + $0x8] sm:$0xff]  ;;  %v48_v6 = vadd.f32 %v42_v1, %v41_v0 }
  0x26   :  { %v54_v5 = vmul.f32 %v52_v4, %v51_v2  ;;  %v58_v7 = vadd.f32 %v52_v4, %v51_v2 }
  0x28   :  { %v55_v8 = vadd.f32 %v54_v5, %v44_v3  ;;  %v59_v9 = vadd.f32 %v58_v7, %v48_v6 }
  0x2a   :  { %65 = vadd.xlane.f32.xlu0 %v55_v8 }
  0x2e   :  { %68 = vadd.xlane.f32.xlu0 %v59_v9 }
  0xb7   :  { %v66_v10 = vpop.xlane.xlu0 %65 }
  0xb8   :  { %v71_v14 = vadd.f32 1e-07, %v66_v10 }
  0xbb   :  { %v69_v11 = vpop.xlane.xlu0 %68 }
  0xbc   :  { %v70_v12 = vsub.f32 %v69_v11, %v66_v10 }
  0xbe   :  { %v72_v13 = vadd.f32 1e-07, %v70_v12 }
  0xc0   :  { %85 = vrcp.f32 %v72_v13 }
  0xca   :  { %v86_v15 = vpop.eup %85 }
  0xcb   :  { %v74_v16 = vmul.f32 %v86_v15, %v71_v14 }
  0xcd   :  { %76 = vst.msk [vmem:[%s181_s2] sm:$0xff] %vm75_vm0, %v74_v16 }
  0xce   :  { %81 = vsyncpa [#allocation5], 1 }
  0xcf   :  { %82 = vsyncpa [#allocation7], 1 }

</bundles_post_ra>
